<compile_context>
chip_gen: v7x
topology: tpu7x:2x2x1
jax: 0.10.0
libtpu: 0.0.40
codegen_flags: <defaults>
</compile_context>

<pallas_src>
import jax
import jax.numpy as jnp
from jax.experimental import pallas as pl
from jax.experimental.pallas import tpu as pltpu


def mlp_kernel(x_ref, w1_ref, b1_ref, w2_ref, b2_ref, o_ref):
    # First linear (bf16 MXU matmul, f32 accumulation) + bias + ReLU in f32.
    h = jnp.dot(x_ref[...], w1_ref[...], preferred_element_type=jnp.float32)
    h = jnp.maximum(h + b1_ref[...], 0.0)       # b1_ref is (1, Hp) -> broadcasts
    # (Dropout == identity in eval mode)
    # Second linear + bias + ReLU. Cast h back to bf16 for the MXU, accumulate f32.
    o = jnp.dot(h.astype(w2_ref.dtype), w2_ref[...],
                preferred_element_type=jnp.float32)
    o_ref[...] = jnp.maximum(o + b2_ref[...], 0.0).astype(o_ref.dtype)


def _round_up(n, m):
    return ((n + m - 1) // m) * m


def mlp_forward(x, w1, b1, w2, b2, *, block_m=256, compute_dtype=jnp.bfloat16):
    """x: [B, E], w1: [E, H], b1: [H], w2: [H, C], b2: [C]  ->  [B, C]."""
    B, E = x.shape
    H = w1.shape[1]
    C = w2.shape[1]
    out_dtype = x.dtype

    # Lane-dense padding: feature dims to multiples of 128 (zero padding -> no
    # contribution to the matmuls; ReLU(0 + 0) = 0 in the padded columns).
    Ep = _round_up(E, 128)
    Hp = _round_up(H, 128)
    Cp = _round_up(C, 128)

    # Batch tiling: block_m is a multiple of 128; pad B so every tile is full
    # (avoids partial-tile masked stores and garbage rows in the last block).
    bm = min(block_m, _round_up(B, 128))
    Bp = _round_up(B, bm)

    xp = jnp.zeros((Bp, Ep), compute_dtype).at[:B, :E].set(x.astype(compute_dtype))
    w1p = jnp.zeros((Ep, Hp), compute_dtype).at[:E, :H].set(w1.astype(compute_dtype))
    w2p = jnp.zeros((Hp, Cp), compute_dtype).at[:H, :C].set(w2.astype(compute_dtype))
    b1p = jnp.zeros((1, Hp), jnp.float32).at[0, :H].set(b1.astype(jnp.float32))
    b2p = jnp.zeros((1, Cp), jnp.float32).at[0, :C].set(b2.astype(jnp.float32))

    grid = (Bp // bm,)

    out_padded = pl.pallas_call(
        mlp_kernel,
        out_shape=jax.ShapeDtypeStruct((Bp, Cp), jnp.float32),
        grid_spec=pltpu.PrefetchScalarGridSpec(
            num_scalar_prefetch=0,
            grid=grid,
            in_specs=[
                # batch-tiled activations (bf16, lane-dense last dim)
                pl.BlockSpec((bm, Ep), lambda i: (i, 0)),
                # weights / biases: full-array blocks, resident across the grid
                pl.BlockSpec((Ep, Hp), lambda i: (0, 0)),
                pl.BlockSpec((1, Hp), lambda i: (0, 0)),
                pl.BlockSpec((Hp, Cp), lambda i: (0, 0)),
                pl.BlockSpec((1, Cp), lambda i: (0, 0)),
            ],
            # lane-dense (multiple-of-128) output block -> unmasked vector stores
            out_specs=pl.BlockSpec((bm, Cp), lambda i: (i, 0)),
        ),
        compiler_params=pltpu.CompilerParams(
            dimension_semantics=("parallel",),
            vmem_limit_bytes=64 * 1024 * 1024,
        ),
    )(xp, w1p, b1p, w2p, b2p)

    # Strip the padding back off.
    return out_padded[:B, :C].astype(out_dtype)


def mlp_reference(x, w1, b1, w2, b2, compute_dtype=jnp.bfloat16):
    # Same numerics as the kernel: bf16 matmul inputs, f32 accumulation/epilogue.
    xb = x.astype(compute_dtype)
    w1b = w1.astype(compute_dtype)
    w2b = w2.astype(compute_dtype)
    h = jnp.maximum(
        jnp.dot(xb, w1b, preferred_element_type=jnp.float32) + b1.astype(jnp.float32),
        0.0)
    o = jnp.maximum(
        jnp.dot(h.astype(compute_dtype), w2b, preferred_element_type=jnp.float32)
        + b2.astype(jnp.float32),
        0.0)
    return o.astype(x.dtype)


if __name__ == "__main__":
    # Shapes consistent with the module's forward:
    # num_of_embedding=32, hidden_channels=32, num_of_cell_type=16.
    # Batch of 512 so the grid has 2 parallel tiles at block_m=256.
    B, E, H, C = 512, 32, 32, 16

    key = jax.random.PRNGKey(0)
    kx, k1, k2, k3, k4 = jax.random.split(key, 5)

    x = jax.random.normal(kx, (B, E), dtype=jnp.float32)
    # deterministic parameter init (uniform, roughly matching nn.Linear's scale)
    w1 = jax.random.uniform(k1, (E, H), dtype=jnp.float32,
                            minval=-1.0 / jnp.sqrt(E), maxval=1.0 / jnp.sqrt(E))
    b1 = jax.random.uniform(k2, (H,), dtype=jnp.float32,
                            minval=-1.0 / jnp.sqrt(E), maxval=1.0 / jnp.sqrt(E))
    w2 = jax.random.uniform(k3, (H, C), dtype=jnp.float32,
                            minval=-1.0 / jnp.sqrt(H), maxval=1.0 / jnp.sqrt(H))
    b2 = jax.random.uniform(k4, (C,), dtype=jnp.float32,
                            minval=-1.0 / jnp.sqrt(H), maxval=1.0 / jnp.sqrt(H))

    out = mlp_forward(x, w1, b1, w2, b2)
    out = jax.block_until_ready(out)

    ref = mlp_reference(x, w1, b1, w2, b2)
    assert out.shape == (B, C)
    assert jnp.allclose(out, ref, atol=2e-3, rtol=2e-3), "mismatch vs bf16 reference"

    # Loose sanity check against the pure-f32 PyTorch-equivalent math.
    ref_f32 = jnp.maximum(jnp.maximum(x @ w1 + b1, 0.0) @ w2 + b2, 0.0)
    assert jnp.allclose(out, ref_f32, atol=5e-2, rtol=5e-2), "mismatch vs f32 reference"

    print("KERNEL_OK")
</pallas_src>

<mosaic_0001>
module attributes {stable_mosaic.version = 11 : i64} {
  func.func @mlp_kernel(%arg0: i32, %arg1: memref<256x128xbf16, #tpu.memory_space<vmem>>, %arg2: memref<128x128xbf16, #tpu.memory_space<vmem>>, %arg3: memref<1x128xf32, #tpu.memory_space<vmem>>, %arg4: memref<128x128xbf16, #tpu.memory_space<vmem>>, %arg5: memref<1x128xf32, #tpu.memory_space<vmem>>, %arg6: memref<256x128xf32, #tpu.memory_space<vmem>>) attributes {dimension_semantics = [#tpu.dimension_semantics<parallel>], iteration_bounds = array<i64: 2>, scalar_prefetch = 0 : i64, scratch_operands = 0 : i64, tpu.core_type = #tpu.core_type<tc>, window_params = [{transform_indices = @transform_0, window_bounds = array<i64: 256, 128>}, {pipeline_mode = #tpu.pipeline_mode<synchronous>, transform_indices = @transform_1, window_bounds = array<i64: 128, 128>}, {pipeline_mode = #tpu.pipeline_mode<synchronous>, transform_indices = @transform_2, window_bounds = array<i64: 1, 128>}, {pipeline_mode = #tpu.pipeline_mode<synchronous>, transform_indices = @transform_3, window_bounds = array<i64: 128, 128>}, {pipeline_mode = #tpu.pipeline_mode<synchronous>, transform_indices = @transform_4, window_bounds = array<i64: 1, 128>}, {transform_indices = @transform_5, window_bounds = array<i64: 256, 128>}]} {
    %c0 = arith.constant 0 : index
    %c0_0 = arith.constant 0 : index
    %0 = vector.load %arg1[%c0, %c0_0] : memref<256x128xbf16, #tpu.memory_space<vmem>>, vector<256x128xbf16>
    %c0_1 = arith.constant 0 : index
    %c0_2 = arith.constant 0 : index
    %1 = vector.load %arg2[%c0_1, %c0_2] : memref<128x128xbf16, #tpu.memory_space<vmem>>, vector<128x128xbf16>
    %cst = arith.constant dense<0.000000e+00> : vector<256x128xf32>
    %2 = tpu.matmul %0, %1, %cst {dimension_numbers = #tpu.dot_dimension_numbers<[1], [0], [0], [1], [0, 0, 1, 1], [], []>} : vector<256x128xbf16>, vector<128x128xbf16>, vector<256x128xf32> -> vector<256x128xf32>
    %c0_3 = arith.constant 0 : index
    %c0_4 = arith.constant 0 : index
    %3 = vector.load %arg3[%c0_3, %c0_4] : memref<1x128xf32, #tpu.memory_space<vmem>>, vector<1x128xf32>
    %4 = vector.broadcast %3 : vector<1x128xf32> to vector<256x128xf32>
    %5 = arith.addf %2, %4 : vector<256x128xf32>
    %cst_5 = arith.constant 0.000000e+00 : f32
    %6 = vector.broadcast %cst_5 : f32 to vector<256x128xf32>
    %7 = arith.maximumf %5, %6 : vector<256x128xf32>
    %8 = arith.truncf %7 : vector<256x128xf32> to vector<256x128xbf16>
    %c0_6 = arith.constant 0 : index
    %c0_7 = arith.constant 0 : index
    %9 = vector.load %arg4[%c0_6, %c0_7] : memref<128x128xbf16, #tpu.memory_space<vmem>>, vector<128x128xbf16>
    %cst_8 = arith.constant dense<0.000000e+00> : vector<256x128xf32>
    %10 = tpu.matmul %8, %9, %cst_8 {dimension_numbers = #tpu.dot_dimension_numbers<[1], [0], [0], [1], [0, 0, 1, 1], [], []>} : vector<256x128xbf16>, vector<128x128xbf16>, vector<256x128xf32> -> vector<256x128xf32>
    %c0_9 = arith.constant 0 : index
    %c0_10 = arith.constant 0 : index
    %11 = vector.load %arg5[%c0_9, %c0_10] : memref<1x128xf32, #tpu.memory_space<vmem>>, vector<1x128xf32>
    %12 = vector.broadcast %11 : vector<1x128xf32> to vector<256x128xf32>
    %13 = arith.addf %10, %12 : vector<256x128xf32>
    %cst_11 = arith.constant 0.000000e+00 : f32
    %14 = vector.broadcast %cst_11 : f32 to vector<256x128xf32>
    %15 = arith.maximumf %13, %14 : vector<256x128xf32>
    %c0_12 = arith.constant 0 : index
    %c0_13 = arith.constant 0 : index
    %16 = vector.load %arg6[%c0_12, %c0_13] : memref<256x128xf32, #tpu.memory_space<vmem>>, vector<256x128xf32>
    tpu.vector_store %arg6[%c0_12, %c0_13], %15 {strides = array<i32>} : memref<256x128xf32, #tpu.memory_space<vmem>>, vector<256x128xf32>,
    return
  }
  func.func @transform_0(%arg0: i32) -> (i32, i32) {
    %c0_i32 = arith.constant 0 : i32
    %c0_i32_0 = arith.constant 0 : i32
    return %arg0, %c0_i32 : i32, i32
  }
  func.func @transform_1(%arg0: i32) -> (i32, i32) {
    %c0_i32 = arith.constant 0 : i32
    %c0_i32_0 = arith.constant 0 : i32
    %c0_i32_1 = arith.constant 0 : i32
    return %c0_i32, %c0_i32_0 : i32, i32
  }
  func.func @transform_2(%arg0: i32) -> (i32, i32) {
    %c0_i32 = arith.constant 0 : i32
    %c0_i32_0 = arith.constant 0 : i32
    %c0_i32_1 = arith.constant 0 : i32
    return %c0_i32, %c0_i32_0 : i32, i32
  }
  func.func @transform_3(%arg0: i32) -> (i32, i32) {
    %c0_i32 = arith.constant 0 : i32
    %c0_i32_0 = arith.constant 0 : i32
    %c0_i32_1 = arith.constant 0 : i32
    return %c0_i32, %c0_i32_0 : i32, i32
  }
  func.func @transform_4(%arg0: i32) -> (i32, i32) {
    %c0_i32 = arith.constant 0 : i32
    %c0_i32_0 = arith.constant 0 : i32
    %c0_i32_1 = arith.constant 0 : i32
    return %c0_i32, %c0_i32_0 : i32, i32
  }
  func.func @transform_5(%arg0: i32) -> (i32, i32) {
    %c0_i32 = arith.constant 0 : i32
    %c0_i32_0 = arith.constant 0 : i32
    return %arg0, %c0_i32 : i32, i32
  }
}

</mosaic_0001>

<bundles_post_ra>
// kernel: tpu_custom_call.1
= control target key start
LH: loop header
LB: loop body
LE: loop exit
PB: predicated region body
PF: predicated region fallthrough
CT: control target
= control target key end

     0   :  { %10 = vsyncpa [#allocation3], 0  ;;  %s2120_s0 = inlined_call_operand.hbm [shape: bf16[512,128], index: 0, kind: input, shape index: {}]   ;;  %s2121_s1 = inlined_call_operand.hbm [shape: bf16[128,128], index: 1, kind: input, shape index: {}]   ;;  %s2122_s2 = inlined_call_operand.hbm [shape: f32[1,128], index: 2, kind: input, shape index: {}]   ;;  %s2123_s3 = inlined_call_operand.hbm [shape: bf16[128,128], index: 3, kind: input, shape index: {}]   ;;  %s2124_s4 = inlined_call_operand.hbm [shape: f32[1,128], index: 4, kind: input, shape index: {}]   ;;  %s2125_s5 = inlined_call_operand.hbm [shape: f32[512,128], index: 5, kind: output, shape index: {}]  }
   0x1   :  { %12 = vsyncpa [#allocation3 + $0x1], 0 }
   0x2   :  { %13 = vsyncpa [#allocation6], 0 }
   0x3   :  { %14 = vsyncpa [#allocation9], 0 }
   0x4   :  { %15 = vsyncpa [#allocation4], 0 }
   0x5   :  { %17 = vsyncpa [#allocation4 + $0x1], 0  ;;  %s1712_s18 = smov 0   ;;  %s1714_s19 = smov 0  }
   0x6   :  { %s1716_s20 = smov 0   ;;  %s1718_s21 = smov 0  }
   0x7 LB: > { %s1733_s22 = sadd.s32 4294967295, %s1670_s21   ;;  %s1129_s23 = sadd.s32 4294967294, %s1670_s21   ;;  %s1670_s21 = sphi %s1718_s21, %s2148_s21   ;;  %s1666_s20 = sphi %s1716_s20, %s2147_s20   ;;  %s1662_s19 = sphi %s1714_s19, %s2146_s19   ;;  %s1658_s18 = sphi %s1712_s18, %s2145_s18  }
   0x8   : > { %p43_p0 = scmp.ne.s32.totalorder %s1662_s19, %s1658_s18  ;;  %p2126_p1 = scmp.eq.s32.totalorder %s1733_s22, 0 }
   0x9   : > { %p157_p3 = scmp.eq.s32.totalorder %s1129_s23, 1  ;;  %p1130_p5 = scmp.ge.s32.totalorder %s1670_s21, 1 }
   0xa   : > { %p1742_p4 = por %p2126_p1, %p43_p0  ;;  %p164_p7 = scmp.lt.s32.totalorder %s1670_s21, 3 }
   0xb   : > { %p1747_p6 = por %p157_p3, %p43_p0  ;;  %s1672_s27 = smov [#allocation5]  }
   0xc   : > { %s2129_s24 = scalar_select %p1742_p4, 1, 0 }
   0xd   : > { %s2130_s25 = scalar_select %p1747_p6, 1, 0 }
   0xe   : > { %p1752_p8 = pnand %p1130_p5, %p164_p7  ;;  %s176_s28 = sshll.u32 %s1672_s27, 4  ;;  %s1756_s28 = int_to_ptr.vmem [resolvable:$true] %s176_s28 }
   0xf   : > { %s1673_s30 = smov [#allocation8]   ;;  %s1674_s7 = smov [#allocation7]  }
  0x10   : > { %s2131_s26 = scalar_select %p1752_p8, 1, 0 }
  0x11   : > { %p1351_p9 = pneg %p1752_p8  ;;  %s200_s6 = sshll.u32 %s1673_s30, 4  ;;  %s1767_s6 = int_to_ptr.vmem [resolvable:$true] %s200_s6 }
  0x12   : > { %s1769_s8 = sshll.u32 %s1674_s7, 4  ;;  %s1454_s11 = scalar_lea.hbm %s2121_s1, 1024  ;;  %s191_s8 = int_to_ptr.vmem [resolvable:$true] %s1769_s8 }
  0x13   : > { %p1763_p11 = pnand %p1351_p9, %p2126_p1  ;;  %p1455_p12 = scmp.ne.s32.totalorder %s2121_s1, %s1454_s11 }
  0x14   : > { %p1461_p5 = scmp.lt.u32.totalorder %s1454_s11, %s2121_s1 }
  0x15   : > { %p1779_p13 = pneg %p1763_p11 }
  0x17   : > { %p1457_p0 = pnand %p1779_p13, %p1455_p12 }
  0x19   : > { %p1458_p3 = pneg %p1457_p0 }
  0x1b   : > { %p1463_p7 = pnand %p1461_p5, %p1458_p3 }
  0x1d   : > { %1466 = shalt.err (!%p1463_p7)
}
  0x1e   : > { %s1467_s17 = scalar_lea.vmem %s1756_s28, 1024  ;;  %p1475_p2 = scmp.lt.s32.totalorder %s1756_s28, %s1756_s28 }
  0x1f   : > { %p1468_p9 = scmp.ne.s32.totalorder %s1756_s28, %s1467_s17  ;;  %p1476_p6 = scmp.lt.s32.totalorder %s1467_s17, %s1467_s17 }
  0x21   : > { %p1470_p10 = pnand %p1468_p9, %p1779_p13  ;;  %p1477_p12 = por %p1476_p6, %p1475_p2 }
  0x23   : > { %p1471_p1 = pneg %p1470_p10 }
  0x25   : > { %p1478_p0 = pnand %p1477_p12, %p1471_p1 }
  0x27   : > { %1481 = shalt.err (!%p1478_p0)
}
  0x28   : > { %s1675_s23 = smov 64   ;;  %s1676_s27 = smov 4  }
  0x29   : > { %1354 = dma.hbm_to_vmem [thread:$0]  (!%p1763_p11), %s2121_s1, 1024, %s1756_s28, [#allocation6], %s1675_s23, %s1675_s23, %s1676_s27  }
  0x2a   : > { %s1482_s11 = scalar_lea.hbm %s2123_s3, 1024 }
  0x2b   : > { %p1483_p1 = scmp.ne.s32.totalorder %s2123_s3, %s1482_s11  ;;  %p1489_p10 = scmp.lt.u32.totalorder %s1482_s11, %s2123_s3 }
  0x2d   : > { %p1485_p2 = pnand %p1483_p1, %p1779_p13 }
  0x2f   : > { %p1486_p6 = pneg %p1485_p2 }
  0x31   : > { %p1491_p3 = pnand %p1489_p10, %p1486_p6 }
  0x33   : > { %1494 = shalt.err (!%p1491_p3)
}
  0x34   : > { %s1495_s28 = scalar_lea.vmem %s1767_s6, 1024  ;;  %p1503_p12 = scmp.lt.s32.totalorder %s1767_s6, %s1767_s6 }
  0x35   : > { %p1496_p5 = scmp.ne.s32.totalorder %s1767_s6, %s1495_s28  ;;  %p1504_p0 = scmp.lt.s32.totalorder %s1495_s28, %s1495_s28 }
  0x37   : > { %p1498_p7 = pnand %p1496_p5, %p1779_p13  ;;  %p1505_p1 = por %p1504_p0, %p1503_p12 }
  0x39   : > { %p1499_p9 = pneg %p1498_p7 }
  0x3b   : > { %p1506_p2 = pnand %p1505_p1, %p1499_p9 }
  0x3d   : > { %1509 = shalt.err (!%p1506_p2)
}
  0x3e   : > { %1360 = dma.hbm_to_vmem [thread:$0]  (!%p1763_p11), %s2123_s3, 1024, %s1767_s6, [#allocation9], %s1675_s23, %s1675_s23, %s1676_s27  }
  0x3f   : > { %s1510_s10 = scalar_lea.hbm %s2122_s2, 16 }
  0x40   : > { %p1511_p6 = scmp.ne.s32.totalorder %s2122_s2, %s1510_s10  ;;  %p1517_p5 = scmp.lt.u32.totalorder %s1510_s10, %s2122_s2 }
  0x42   : > { %p1513_p10 = pnand %p1511_p6, %p1779_p13 }
  0x44   : > { %p1514_p3 = pneg %p1513_p10 }
  0x46   : > { %p1519_p7 = pnand %p1517_p5, %p1514_p3 }
  0x48   : > { %1522 = shalt.err (!%p1519_p7)
}
  0x49   : > { %s1523_s16 = scalar_lea.vmem %s191_s8, 16  ;;  %s1530_s6 = scalar_lea.vmem %s191_s8, 32 }
  0x4a   : > { %p1524_p9 = scmp.ne.s32.totalorder %s191_s8, %s1523_s16  ;;  %p1531_p1 = scmp.lt.s32.totalorder %s191_s8, %s191_s8 }
  0x4b   : > { %p1532_p2 = scmp.lt.s32.totalorder %s1530_s6, %s1523_s16 }
  0x4c   : > { %p1526_p12 = pnand %p1524_p9, %p1779_p13 }
  0x4d   : > { %p1533_p4 = por %p1532_p2, %p1531_p1 }
  0x4e   : > { %p1527_p0 = pneg %p1526_p12 }
  0x50   : > { %p1534_p8 = pnand %p1533_p4, %p1527_p0 }
  0x52   : > { %1537 = shalt.err (!%p1534_p8)
}
  0x53   : > { %1357 = dma.hbm_to_vmem [thread:$0]  (!%p1763_p11), %s2122_s2, 16, %s191_s8, [#allocation6]  }
  0x54   : > { %s1677_s30 = smov [#allocation10]   ;;  %s1538_s11 = scalar_lea.hbm %s2124_s4, 16 }
  0x55   : > { %s214_s7 = sshll.u32 %s1677_s30, 4  ;;  %p1539_p6 = scmp.ne.s32.totalorder %s2124_s4, %s1538_s11  ;;  %s215_s7 = int_to_ptr.vmem [resolvable:$true] %s214_s7 }
  0x56   : > { %p1545_p10 = scmp.lt.u32.totalorder %s1538_s11, %s2124_s4 }
  0x57   : > { %p1541_p4 = pnand %p1539_p6, %p1779_p13 }
  0x59   : > { %p1542_p8 = pneg %p1541_p4 }
  0x5b   : > { %p1547_p3 = pnand %p1545_p10, %p1542_p8 }
  0x5d   : > { %1550 = shalt.err (!%p1547_p3)
}
  0x5e   : > { %s1551_s8 = scalar_lea.vmem %s215_s7, 16  ;;  %s1558_s6 = scalar_lea.vmem %s215_s7, 32 }
  0x5f   : > { %p1552_p5 = scmp.ne.s32.totalorder %s215_s7, %s1551_s8  ;;  %p1559_p12 = scmp.lt.s32.totalorder %s215_s7, %s215_s7 }
  0x60   : > { %p1560_p0 = scmp.lt.s32.totalorder %s1558_s6, %s1551_s8 }
  0x61   : > { %p1554_p7 = pnand %p1552_p5, %p1779_p13 }
  0x62   : > { %p1561_p1 = por %p1560_p0, %p1559_p12 }
  0x63   : > { %p1555_p9 = pneg %p1554_p7 }
  0x65   : > { %p1562_p2 = pnand %p1561_p1, %p1555_p9 }
  0x67   : > { %1565 = shalt.err (!%p1562_p2)
}
  0x68   : > { %1363 = dma.hbm_to_vmem [thread:$0]  (!%p1763_p11), %s2124_s4, 16, %s215_s7, [#allocation9]  }
  0x69   : > { %s1867_s14 = sadd.s32 1, %s1670_s21   ;;  %s30_s30 = sadd.s32 1, %s1666_s20 }
  0x6a   : > { %s27_s29 = ssub.s32 %s1670_s21, %s1867_s14  ;;  %p37_p13 = scmp.ne.s32.totalorder %s1666_s20, %s1662_s19 }
  0x6b   : > { %p28_p6 = scmp.eq.s32.totalorder %s27_s29, 0  ;;  %p38_p4 = scmp.eq.s32.totalorder %s1670_s21, 0 }
  0x6c   : > { %p2134_p8 = scmp.eq.s32.totalorder %s1733_s22, 1  ;;  %p1376_p3 = scmp.lt.s32.totalorder %s1670_s21, 2 }
  0x6d   : > { %s1883_s10 = scalar_select %p28_p6, %s1666_s20, %s30_s30  }
  0x6e   : > { %p1877_p10 = por %p2134_p8, %p37_p13  ;;  %p39_p5 = por %p38_p4, %p37_p13 }
  0x6f   : > { %s225_s11 = sand.u32 1, %s1666_s20   ;;  %s1185_s7 = sshll.u32 %s1670_s21, 11 }
  0x70   : > { %s1136_s12 = sshll.u32 %s225_s11, 7  ;;  %s1890_s16 = scalar_lea.hbm %s2120_s0, %s1185_s7 }
  0x71   : > { %s229_s8 = scalar_lea.vmem [#allocation2], %s1136_s12  ;;  %p1894_p11 = pnand %p1376_p3, %p39_p5 }
  0x72   : > { %s236_s6 = sshll.u32 %s229_s8, 4  ;;  %s1898_s17 = scalar_lea.sflag [#allocation3], %s225_s11  ;;  %s1892_s6 = int_to_ptr.vmem [resolvable:$true] %s236_s6 }
  0x73   : > { %s1566_s30 = scalar_lea.hbm %s1890_s16, 2048  ;;  %p1568_p9 = pneg %p1894_p11 }
  0x74   : > { %p1567_p7 = scmp.ne.s32.totalorder %s1890_s16, %s1566_s30  ;;  %s1571_s7 = scalar_lea.hbm %s2120_s0, 4096 }
  0x75   : > { %p1572_p1 = scmp.lt.u32.totalorder %s1890_s16, %s2120_s0  ;;  %p1573_p2 = scmp.lt.u32.totalorder %s1571_s7, %s1566_s30 }
  0x76   : > { %p1569_p12 = pnand %p1568_p9, %p1567_p7  ;;  %p1575_p6 = scmp.lt.u32.totalorder %s1566_s30, %s1890_s16 }
  0x77   : > { %p1574_p13 = por %p1573_p2, %p1572_p1 }
  0x78   : > { %p1570_p0 = pneg %p1569_p12 }
  0x79   : > { %p1576_p4 = por %p1575_p6, %p1574_p13 }
  0x7b   : > { %p1577_p8 = pnand %p1576_p4, %p1570_p0 }
  0x7d   : > { %1580 = shalt.err (!%p1577_p8)
}
  0x7e   : > { %s1581_s11 = scalar_lea.vmem %s1892_s6, 2048  ;;  %s1678_s8 = smov [#allocation2]  }
  0x7f   : > { %p1582_p3 = scmp.ne.s32.totalorder %s1892_s6, %s1581_s11  ;;  %s1586_s29 = sshll.u32 %s1678_s8, 4  ;;  %s1587_s29 = int_to_ptr.vmem [resolvable:$false] %s1586_s29 }
  0x80   : > { %s1588_s12 = scalar_lea.vmem %s1587_s29, 4096  ;;  %p1589_p12 = scmp.lt.s32.totalorder %s1892_s6, %s1587_s29 }
  0x81   : > { %p1584_p5 = pnand %p1582_p3, %p1568_p9  ;;  %p1590_p1 = scmp.lt.s32.totalorder %s1588_s12, %s1581_s11 }
  0x83   : > { %p1585_p7 = pneg %p1584_p5  ;;  %p1591_p2 = por %p1590_p1, %p1589_p12 }
  0x85   : > { %p1592_p13 = pnand %p1591_p2, %p1585_p7 }
  0x87   : > { %1595 = shalt.err (!%p1592_p13)
}
  0x88   : > { %1367 = dma.hbm_to_vmem [thread:$0]  (!%p1894_p11), %s1890_s16, 2048, %s1892_s6, %s1898_s17, %s1675_s23, %s1675_s23, %s1676_s27  }
  0x89   : > { %p2137_p9 = scmp.ne.s32.totalorder %s2131_s26, 0 }
  0x8a   : > { %s1932_s30 = sand.u32 (!%p2137_p9), 1, %s1662_s19   ;;  %p2138_p0 = scmp.ne.s32.totalorder (!%p2137_p9), %s2129_s24, 0 }
  0x8b   : > { %248 = sbr.rel (%p2137_p9) target bundleno = 699 (0x2bb), region = 40  ;;  %s1140_s7 = sshll.u32 (!%p2137_p9), %s1932_s30, 7 }
  0x8c   : > { %s251_s13 = scalar_lea.sflag (!%p2137_p9), [#allocation3], %s1932_s30  ;;  %s1936_s15 = scalar_lea.vmem (!%p2137_p9), [#allocation2], %s1140_s7 }
  0x92   : > { %1641 = dma.done.wait (%p2138_p0), %s251_s13, 2048  }
  0x93   : > { %1643 = vsyncadd (%p2138_p0), %s251_s13, 4294965248  ;;  %p2139_p11 = scmp.eq.s32.totalorder %s1733_s22, 0 }
  0x95   : > { %1645 = dma.done.wait (%p2139_p11), [#allocation6], 1040   ;;  %p2140_p6 = pmov %p2139_p11 }
  0x97   : > { %1647 = vsyncadd (%p2140_p6), [#allocation6], 4294966256  ;;  %p2141_p4 = pmov %p2140_p6 }
  0x99   : > { %1649 = dma.done.wait (%p2141_p4), [#allocation9], 1040   ;;  %p2142_p8 = pmov %p2141_p4 }
  0x9a   : > { %v1422_v0 = vld [vmem:[#allocation5] sm:$0xff]   ;;  %v1423_v1 = vld [vmem:[#allocation5 + $0x8] sm:$0xff]   ;;  %v1424_v2 = vld [vmem:[#allocation5 + $0x10] sm:$0xff]   ;;  %s1145_s24 = sshll.u32 %s1932_s30, 8  ;;  %s1186_s23 = sshll.u32 %s1733_s22, 12 }
  0x9b   : > { %1651 = vsyncadd (%p2142_p8), [#allocation9], 4294966256  ;;  %1235 = vmatprep.subr.bf16.mxu0 %v1422_v0  ;;  %v1425_v3 = vld [vmem:[#allocation5 + $0x18] sm:$0xff]   ;;  %v1430_v4 = vld [vmem:[%s1936_s15] sm:$0xff]   ;;  %s2007_s26 = scalar_lea.vmem [#allocation11], %s1145_s24  ;;  %s2071_s28 = scalar_lea.hbm %s2125_s5, %s1186_s23 }
  0x9c   : > { %1236 = vmatpush3.bf16.msra.mxu0 %v1422_v0  ;;  %1251 = vmatprep.mubr.bf16.mxu0 %v1430_v4  ;;  %v1426_v5 = vld [vmem:[#allocation5 + $0x20] sm:$0xff]   ;;  %v1427_v6 = vld [vmem:[#allocation5 + $0x28] sm:$0xff]   ;;  %v1428_v7 = vld [vmem:[#allocation5 + $0x30] sm:$0xff]   ;;  %s1018_s27 = sshll.u32 %s2007_s26, 4  ;;  %s1005_s22 = scalar_lea.sflag [#allocation4], %s1932_s30  ;;  %s2073_s27 = int_to_ptr.vmem [resolvable:$true] %s1018_s27 }
  0x9d   : > { %1237 = vmatprep.subr.bf16.mxu0 %v1423_v1  ;;  %v1429_v8 = vld [vmem:[#allocation5 + $0x38] sm:$0xff]   ;;  %v1446_v9 = vld [vmem:[#allocation8] sm:$0xff]   ;;  %v1447_v10 = vld [vmem:[#allocation8 + $0x8] sm:$0xff]   ;;  %s1596_s17 = scalar_lea.vmem %s2073_s27, 4096  ;;  %s1679_s11 = smov [#allocation11]  }
  0x9e   : > { %1283 = vmatprep.subr.bf16.mxu1 %v1446_v9  ;;  %v1448_v11 = vld [vmem:[#allocation8 + $0x10] sm:$0xff]   ;;  %v1431_v12 = vld [vmem:[%s1936_s15 + $0x8] sm:$0xff]   ;;  %v1449_v14 = vld [vmem:[#allocation8 + $0x18] sm:$0xff]   ;;  %p1597_p3 = scmp.ne.s32.totalorder %s2073_s27, %s1596_s17  ;;  %s1600_s8 = sshll.u32 %s1679_s11, 4  ;;  %s1601_s8 = int_to_ptr.vmem [resolvable:$false] %s1600_s8 }
  0x9f   : > { %1284 = vmatpush3.bf16.msra.mxu1 %v1446_v9  ;;  %v1432_v13 = vld [vmem:[%s1936_s15 + $0x10] sm:$0xff]   ;;  %v1450_v15 = vld [vmem:[#allocation8 + $0x20] sm:$0xff]   ;;  %v1433_v16 = vld [vmem:[%s1936_s15 + $0x18] sm:$0xff]   ;;  %s1602_s29 = scalar_lea.vmem %s1601_s8, 8192  ;;  %p1603_p12 = scmp.lt.s32.totalorder %s2073_s27, %s1601_s8 }
  0xa0   : > { %1238 = vmatpush3.bf16.msra.mxu0 %v1423_v1  ;;  %1285 = vmatprep.subr.bf16.mxu1 %v1447_v10  ;;  %v1434_v17 = vld [vmem:[%s1936_s15 + $0x20] sm:$0xff]   ;;  %v1451_v18 = vld [vmem:[#allocation8 + $0x28] sm:$0xff]   ;;  %v1437_v21 = vld [vmem:[%s1936_s15 + $0x38] sm:$0xff]   ;;  %p1598_p5 = pnand %p1597_p3, %p1877_p10  ;;  %p1604_p1 = scmp.lt.s32.totalorder %s1602_s29, %s1596_s17 }
  0xa1   : > { %1239 = vmatprep.subr.bf16.mxu0 %v1424_v2  ;;  %v1435_v19 = vld [vmem:[%s1936_s15 + $0x28] sm:$0xff]   ;;  %v1436_v20 = vld [vmem:[%s1936_s15 + $0x30] sm:$0xff]   ;;  %v1438_v22 = vld [vmem:[%s1936_s15 + $0x40] sm:$0xff]  }
  0xa2   : > { %v1439_v23 = vld [vmem:[%s1936_s15 + $0x48] sm:$0xff]   ;;  %v1440_v24 = vld [vmem:[%s1936_s15 + $0x50] sm:$0xff]   ;;  %v1441_v25 = vld [vmem:[%s1936_s15 + $0x58] sm:$0xff]   ;;  %p1599_p7 = pneg %p1598_p5  ;;  %p1605_p2 = por %p1604_p1, %p1603_p12 }
  0xa3   : > { %1286 = vmatpush3.bf16.msra.mxu1 %v1447_v10  ;;  %v1442_v26 = vld [vmem:[%s1936_s15 + $0x60] sm:$0xff]   ;;  %v1443_v27 = vld [vmem:[%s1936_s15 + $0x68] sm:$0xff]   ;;  %v1444_v28 = vld [vmem:[%s1936_s15 + $0x70] sm:$0xff]  }
  0xa4   : > { %1240 = vmatpush3.bf16.msra.mxu0 %v1424_v2  ;;  %1287 = vmatprep.subr.bf16.mxu1 %v1448_v11  ;;  %v1445_v29 = vld [vmem:[%s1936_s15 + $0x78] sm:$0xff]   ;;  %v1966_v32 = vld [vmem:[#allocation7] ss:$0 sm:$0xff]  ;;  %p1606_p13 = pnand %p1605_p2, %p1599_p7 }
  0xa5   : > { %1241 = vmatprep.subr.bf16.mxu0 %v1425_v3  ;;  %v1452_v30 = vld [vmem:[#allocation8 + $0x30] sm:$0xff]   ;;  %v1453_v31 = vld [vmem:[#allocation8 + $0x38] sm:$0xff]  }
  0xa7   : > { %1288 = vmatpush3.bf16.msra.mxu1 %v1448_v11 }
  0xa8   : > { %1242 = vmatpush3.bf16.msra.mxu0 %v1425_v3  ;;  %1289 = vmatprep.subr.bf16.mxu1 %v1449_v14 }
  0xa9   : > { %1243 = vmatprep.subr.bf16.mxu0 %v1426_v5 }
  0xab   : > { %1290 = vmatpush3.bf16.msra.mxu1 %v1449_v14 }
  0xac   : > { %1244 = vmatpush3.bf16.msra.mxu0 %v1426_v5  ;;  %1291 = vmatprep.subr.bf16.mxu1 %v1450_v15 }
  0xad   : > { %1245 = vmatprep.subr.bf16.mxu0 %v1427_v6 }
  0xaf   : > { %1292 = vmatpush3.bf16.msra.mxu1 %v1450_v15 }
  0xb0   : > { %1246 = vmatpush3.bf16.msra.mxu0 %v1427_v6  ;;  %1293 = vmatprep.subr.bf16.mxu1 %v1451_v18 }
  0xb1   : > { %1247 = vmatprep.subr.bf16.mxu0 %v1428_v7 }
  0xb3   : > { %1294 = vmatpush3.bf16.msra.mxu1 %v1451_v18 }
  0xb4   : > { %1248 = vmatpush3.bf16.msra.mxu0 %v1428_v7  ;;  %1295 = vmatprep.subr.bf16.mxu1 %v1452_v30 }
  0xb5   : > { %1249 = vmatprep.subr.bf16.mxu0 %v1429_v8 }
  0xb7   : > { %1296 = vmatpush3.bf16.msra.mxu1 %v1452_v30 }
  0xb8   : > { %1250 = vmatpush3.bf16.msra.mxu0 %v1429_v8  ;;  %1297 = vmatprep.subr.bf16.mxu1 %v1453_v31 }
  0xbb   : > { %1252 = vmatmul.mubr.bf16.vlgmr.msra.gmra.mrb[0].mxu0 %v1431_v12  ;;  %1298 = vmatpush3.bf16.msra.mxu1 %v1453_v31 }
  0xbc   : > { %1255 = vmatprep.mubr.bf16.mxu0 %v1432_v13 }
  0xc3   : > { %1256 = vmatmul.mubr.bf16.gmra.mrb[4].mxu0 %v1433_v16 }
  0xc4   : > { %1259 = vmatprep.mubr.bf16.mxu0 %v1434_v17 }
  0xcb   : > { %1260 = vmatmul.mubr.bf16.gmra.mrb[8].mxu0 %v1435_v19 }
  0xcc   : > { %1263 = vmatprep.mubr.bf16.mxu0 %v1436_v20 }
  0xd3   : > { %1264 = vmatmul.mubr.bf16.gmra.mrb[12].mxu0 %v1437_v21 }
  0xd4   : > { %1267 = vmatprep.mubr.bf16.mxu0 %v1438_v22 }
  0xdb   : > { %1268 = vmatmul.mubr.bf16.gmra.mrb[16].mxu0 %v1439_v23 }
  0xdc   : > { %1271 = vmatprep.mubr.bf16.mxu0 %v1440_v24 }
  0xe3   : > { %1272 = vmatmul.mubr.bf16.gmra.mrb[20].mxu0 %v1441_v25 }
  0xe4   : > { %1275 = vmatprep.mubr.bf16.mxu0 %v1442_v26 }
  0xeb   : > { %1276 = vmatmul.mubr.bf16.gmra.mrb[24].mxu0 %v1443_v27 }
  0xec   : > { %1279 = vmatprep.mubr.bf16.mxu0 %v1444_v28 }
  0xf3   : > { %1280 = vmatmul.mubr.bf16.gmra.mrb[28].mxu0 %v1445_v29 }
 0x18e   : > { %v1253_v33 = vpop.f32.mrb[0].mxu0 }
 0x18f   : > { %v542_v34 = vadd.f32 %v1253_v33, %v1966_v32  ;;  %v533_v35 = vpop.f32.mrb[1].mxu0 }
 0x190   : > { %v534_v36 = vadd.f32 %v1966_v32, %v533_v35  ;;  %v1254_v37 = vpop.f32.mrb[2].mxu0 }
 0x191   : > { %v545_v38 = vadd.f32 %v1254_v37, %v1966_v32  ;;  %v536_v39 = vpop.f32.mrb[3].mxu0  ;;  %v662_v41 = vmax.f32 %v542_v34, 0.0 }
 0x192   : > { %v537_v40 = vadd.f32 %v1966_v32, %v536_v39  ;;  %v660_v43 = vmax.f32 %v534_v36, 0.0 }
 0x193   : > { %v663_v42 = vmax.f32 %v545_v38, 0.0 }
 0x194   : > { %v661_v44 = vmax.f32 %v537_v40, 0.0 }
 0x195   : > { %v693_v45 = vpack.c.bf16 %v663_v42, %v662_v41 }
 0x196   : > { %v1257_v46 = vpop.f32.mrb[4].mxu0  ;;  %v692_v47 = vpack.c.bf16 %v661_v44, %v660_v43 }
 0x197   : > { %v558_v48 = vadd.f32 %v1257_v46, %v1966_v32  ;;  %v549_v49 = vpop.f32.mrb[5].mxu0 }
 0x198   : > { %v550_v50 = vadd.f32 %v1966_v32, %v549_v49  ;;  %v1258_v51 = vpop.f32.mrb[6].mxu0  ;;  %1299 = vmatprep.mubr.bf16.mxu1 %v692_v47 }
 0x199   : > { %v561_v52 = vadd.f32 %v1258_v51, %v1966_v32  ;;  %v552_v53 = vpop.f32.mrb[7].mxu0  ;;  %1300 = vmatmul.mubr.bf16.vlgmr.msra.gmra.mrb[0].mxu1 %v693_v45  ;;  %v666_v55 = vmax.f32 %v558_v48, 0.0 }
 0x19a   : > { %v553_v54 = vadd.f32 %v1966_v32, %v552_v53  ;;  %v664_v57 = vmax.f32 %v550_v50, 0.0 }
 0x19b   : > { %v667_v56 = vmax.f32 %v561_v52, 0.0 }
 0x19c   : > { %v665_v58 = vmax.f32 %v553_v54, 0.0 }
 0x19d   : > { %v695_v59 = vpack.c.bf16 %v667_v56, %v666_v55 }
 0x19e   : > { %v694_v60 = vpack.c.bf16 %v665_v58, %v664_v57  ;;  %v1261_v61 = vpop.f32.mrb[8].mxu0 }
 0x19f   : > { %v574_v62 = vadd.f32 %v1261_v61, %v1966_v32  ;;  %v565_v63 = vpop.f32.mrb[9].mxu0 }
 0x1a0   : > { %v566_v0 = vadd.f32 %v1966_v32, %v565_v63  ;;  %v1262_v1 = vpop.f32.mrb[10].mxu0  ;;  %1303 = vmatprep.mubr.bf16.mxu1 %v694_v60 }
 0x1a1   : > { %v577_v2 = vadd.f32 %v1262_v1, %v1966_v32  ;;  %v568_v3 = vpop.f32.mrb[11].mxu0  ;;  %1304 = vmatmul.mubr.bf16.gmra.mrb[4].mxu1 %v695_v59  ;;  %v670_v5 = vmax.f32 %v574_v62, 0.0 }
 0x1a2   : > { %v569_v4 = vadd.f32 %v1966_v32, %v568_v3  ;;  %v668_v7 = vmax.f32 %v566_v0, 0.0 }
 0x1a3   : > { %v671_v6 = vmax.f32 %v577_v2, 0.0 }
 0x1a4   : > { %v669_v8 = vmax.f32 %v569_v4, 0.0 }
 0x1a5   : > { %v697_v9 = vpack.c.bf16 %v671_v6, %v670_v5 }
 0x1a6   : > { %v696_v10 = vpack.c.bf16 %v669_v8, %v668_v7  ;;  %v1265_v11 = vpop.f32.mrb[12].mxu0 }
 0x1a7   : > { %v590_v12 = vadd.f32 %v1265_v11, %v1966_v32  ;;  %v581_v13 = vpop.f32.mrb[13].mxu0 }
 0x1a8   : > { %v582_v14 = vadd.f32 %v1966_v32, %v581_v13  ;;  %v1266_v15 = vpop.f32.mrb[14].mxu0  ;;  %1307 = vmatprep.mubr.bf16.mxu1 %v696_v10 }
 0x1a9   : > { %v593_v16 = vadd.f32 %v1266_v15, %v1966_v32  ;;  %v584_v17 = vpop.f32.mrb[15].mxu0  ;;  %1308 = vmatmul.mubr.bf16.gmra.mrb[8].mxu1 %v697_v9  ;;  %v674_v19 = vmax.f32 %v590_v12, 0.0 }
 0x1aa   : > { %v585_v18 = vadd.f32 %v1966_v32, %v584_v17  ;;  %v672_v21 = vmax.f32 %v582_v14, 0.0 }
 0x1ab   : > { %v675_v20 = vmax.f32 %v593_v16, 0.0 }
 0x1ac   : > { %v673_v22 = vmax.f32 %v585_v18, 0.0  ;;  %v2000_v18 = vld [vmem:[#allocation10] ss:$0 sm:$0xff] }
 0x1ad   : > { %v699_v23 = vpack.c.bf16 %v675_v20, %v674_v19 }
 0x1ae   : > { %v698_v24 = vpack.c.bf16 %v673_v22, %v672_v21  ;;  %v1269_v25 = vpop.f32.mrb[16].mxu0 }
 0x1af   : > { %v606_v26 = vadd.f32 %v1269_v25, %v1966_v32  ;;  %v597_v27 = vpop.f32.mrb[17].mxu0 }
 0x1b0   : > { %v598_v28 = vadd.f32 %v1966_v32, %v597_v27  ;;  %v1270_v29 = vpop.f32.mrb[18].mxu0  ;;  %1311 = vmatprep.mubr.bf16.mxu1 %v698_v24 }
 0x1b1   : > { %v609_v30 = vadd.f32 %v1270_v29, %v1966_v32  ;;  %v600_v31 = vpop.f32.mrb[19].mxu0  ;;  %1312 = vmatmul.mubr.bf16.gmra.mrb[12].mxu1 %v699_v23  ;;  %v678_v34 = vmax.f32 %v606_v26, 0.0 }
 0x1b2   : > { %v601_v33 = vadd.f32 %v1966_v32, %v600_v31  ;;  %v676_v36 = vmax.f32 %v598_v28, 0.0 }
 0x1b3   : > { %v679_v35 = vmax.f32 %v609_v30, 0.0 }
 0x1b4   : > { %v677_v37 = vmax.f32 %v601_v33, 0.0 }
 0x1b5   : > { %v701_v38 = vpack.c.bf16 %v679_v35, %v678_v34 }
 0x1b6   : > { %v700_v39 = vpack.c.bf16 %v677_v37, %v676_v36  ;;  %v1273_v40 = vpop.f32.mrb[20].mxu0 }
 0x1b7   : > { %v622_v41 = vadd.f32 %v1273_v40, %v1966_v32  ;;  %v613_v42 = vpop.f32.mrb[21].mxu0 }
 0x1b8   : > { %v614_v43 = vadd.f32 %v1966_v32, %v613_v42  ;;  %v1274_v44 = vpop.f32.mrb[22].mxu0  ;;  %1315 = vmatprep.mubr.bf16.mxu1 %v700_v39 }
 0x1b9   : > { %v625_v45 = vadd.f32 %v1274_v44, %v1966_v32  ;;  %v616_v46 = vpop.f32.mrb[23].mxu0  ;;  %1316 = vmatmul.mubr.bf16.gmra.mrb[16].mxu1 %v701_v38  ;;  %v682_v48 = vmax.f32 %v622_v41, 0.0 }
 0x1ba   : > { %v617_v47 = vadd.f32 %v1966_v32, %v616_v46  ;;  %v680_v50 = vmax.f32 %v614_v43, 0.0 }
 0x1bb   : > { %v683_v49 = vmax.f32 %v625_v45, 0.0 }
 0x1bc   : > { %v681_v51 = vmax.f32 %v617_v47, 0.0 }
 0x1bd   : > { %v703_v52 = vpack.c.bf16 %v683_v49, %v682_v48 }
 0x1be   : > { %v702_v53 = vpack.c.bf16 %v681_v51, %v680_v50  ;;  %v1277_v54 = vpop.f32.mrb[24].mxu0 }
 0x1bf   : > { %v638_v55 = vadd.f32 %v1277_v54, %v1966_v32  ;;  %v629_v56 = vpop.f32.mrb[25].mxu0 }
 0x1c0   : > { %v630_v57 = vadd.f32 %v1966_v32, %v629_v56  ;;  %v1278_v58 = vpop.f32.mrb[26].mxu0  ;;  %1319 = vmatprep.mubr.bf16.mxu1 %v702_v53 }
 0x1c1   : > { %v641_v59 = vadd.f32 %v1278_v58, %v1966_v32  ;;  %v632_v60 = vpop.f32.mrb[27].mxu0  ;;  %1320 = vmatmul.mubr.bf16.gmra.mrb[20].mxu1 %v703_v52  ;;  %v686_v62 = vmax.f32 %v638_v55, 0.0 }
 0x1c2   : > { %v633_v61 = vadd.f32 %v1966_v32, %v632_v60  ;;  %v684_v0 = vmax.f32 %v630_v57, 0.0 }
 0x1c3   : > { %v687_v63 = vmax.f32 %v641_v59, 0.0 }
 0x1c4   : > { %v685_v1 = vmax.f32 %v633_v61, 0.0 }
 0x1c5   : > { %v705_v2 = vpack.c.bf16 %v687_v63, %v686_v62 }
 0x1c6   : > { %v704_v3 = vpack.c.bf16 %v685_v1, %v684_v0  ;;  %v1281_v4 = vpop.f32.mrb[28].mxu0 }
 0x1c7   : > { %v654_v5 = vadd.f32 %v1281_v4, %v1966_v32  ;;  %v645_v6 = vpop.f32.mrb[29].mxu0 }
 0x1c8   : > { %v646_v7 = vadd.f32 %v1966_v32, %v645_v6  ;;  %v1282_v8 = vpop.f32.mrb[30].mxu0  ;;  %1323 = vmatprep.mubr.bf16.mxu1 %v704_v3 }
 0x1c9   : > { %v657_v9 = vadd.f32 %v1282_v8, %v1966_v32  ;;  %v648_v10 = vpop.f32.mrb[31].mxu0  ;;  %1324 = vmatmul.mubr.bf16.gmra.mrb[24].mxu1 %v705_v2  ;;  %v690_v12 = vmax.f32 %v654_v5, 0.0 }
 0x1ca   : > { %v649_v11 = vadd.f32 %v1966_v32, %v648_v10  ;;  %v688_v14 = vmax.f32 %v646_v7, 0.0 }
 0x1cb   : > { %v691_v13 = vmax.f32 %v657_v9, 0.0 }
 0x1cc   : > { %v689_v15 = vmax.f32 %v649_v11, 0.0 }
 0x1cd   : > { %v707_v16 = vpack.c.bf16 %v691_v13, %v690_v12 }
 0x1ce   : > { %v706_v17 = vpack.c.bf16 %v689_v15, %v688_v14 }
 0x1d0   : > { %1327 = vmatprep.mubr.bf16.mxu1 %v706_v17 }
 0x1d1   : > { %1328 = vmatmul.mubr.bf16.gmra.mrb[28].mxu1 %v707_v16 }
 0x26c   : > { %v1301_v19 = vpop.f32.mrb[0].mxu1 }
 0x26d   : > { %v822_v20 = vadd.f32 %v1301_v19, %v2000_v18  ;;  %v813_v21 = vpop.f32.mrb[1].mxu1 }
 0x26e   : > { %v814_v22 = vadd.f32 %v2000_v18, %v813_v21  ;;  %v1302_v23 = vpop.f32.mrb[2].mxu1 }
 0x26f   : > { %v942_v24 = vmax.f32 %v822_v20, 0.0  ;;  %v825_v32 = vadd.f32 %v1302_v23, %v2000_v18  ;;  %v816_v25 = vpop.f32.mrb[3].mxu1 }
 0x270   : > { %v940_v26 = vmax.f32 %v814_v22, 0.0  ;;  %v817_v27 = vadd.f32 %v2000_v18, %v816_v25 }
 0x271   : > { %974 = vst [vmem:[%s2007_s26 + $0x10] sm:$0xff] %v942_v24  ;;  %v943_v28 = vmax.f32 %v825_v32, 0.0 }
 0x272   : > { %972 = vst [vmem:[%s2007_s26] sm:$0xff] %v940_v26  ;;  %v941_v29 = vmax.f32 %v817_v27, 0.0 }
 0x273   : > { %975 = vst [vmem:[%s2007_s26 + $0x18] sm:$0xff] %v943_v28 }
 0x274   : > { %973 = vst [vmem:[%s2007_s26 + $0x8] sm:$0xff] %v941_v29  ;;  %v1305_v30 = vpop.f32.mrb[4].mxu1 }
 0x275   : > { %v838_v31 = vadd.f32 %v1305_v30, %v2000_v18  ;;  %v829_v33 = vpop.f32.mrb[5].mxu1 }
 0x276   : > { %v830_v34 = vadd.f32 %v2000_v18, %v829_v33  ;;  %v1306_v35 = vpop.f32.mrb[6].mxu1 }
 0x277   : > { %v946_v36 = vmax.f32 %v838_v31, 0.0  ;;  %v841_v37 = vadd.f32 %v1306_v35, %v2000_v18  ;;  %v832_v38 = vpop.f32.mrb[7].mxu1 }
 0x278   : > { %v944_v39 = vmax.f32 %v830_v34, 0.0  ;;  %v833_v40 = vadd.f32 %v2000_v18, %v832_v38 }
 0x279   : > { %978 = vst [vmem:[%s2007_s26 + $0x30] sm:$0xff] %v946_v36  ;;  %v947_v41 = vmax.f32 %v841_v37, 0.0 }
 0x27a   : > { %976 = vst [vmem:[%s2007_s26 + $0x20] sm:$0xff] %v944_v39  ;;  %v945_v42 = vmax.f32 %v833_v40, 0.0 }
 0x27b   : > { %979 = vst [vmem:[%s2007_s26 + $0x38] sm:$0xff] %v947_v41 }
 0x27c   : > { %977 = vst [vmem:[%s2007_s26 + $0x28] sm:$0xff] %v945_v42  ;;  %v1309_v43 = vpop.f32.mrb[8].mxu1 }
 0x27d   : > { %v854_v44 = vadd.f32 %v1309_v43, %v2000_v18  ;;  %v845_v45 = vpop.f32.mrb[9].mxu1 }
 0x27e   : > { %v846_v46 = vadd.f32 %v2000_v18, %v845_v45  ;;  %v1310_v47 = vpop.f32.mrb[10].mxu1 }
 0x27f   : > { %v950_v48 = vmax.f32 %v854_v44, 0.0  ;;  %v857_v49 = vadd.f32 %v1310_v47, %v2000_v18  ;;  %v848_v50 = vpop.f32.mrb[11].mxu1 }
 0x280   : > { %v948_v51 = vmax.f32 %v846_v46, 0.0  ;;  %v849_v52 = vadd.f32 %v2000_v18, %v848_v50 }
 0x281   : > { %982 = vst [vmem:[%s2007_s26 + $0x50] sm:$0xff] %v950_v48  ;;  %v951_v53 = vmax.f32 %v857_v49, 0.0 }
 0x282   : > { %980 = vst [vmem:[%s2007_s26 + $0x40] sm:$0xff] %v948_v51  ;;  %v949_v54 = vmax.f32 %v849_v52, 0.0 }
 0x283   : > { %983 = vst [vmem:[%s2007_s26 + $0x58] sm:$0xff] %v951_v53 }
 0x284   : > { %981 = vst [vmem:[%s2007_s26 + $0x48] sm:$0xff] %v949_v54  ;;  %v1313_v55 = vpop.f32.mrb[12].mxu1 }
 0x285   : > { %v870_v56 = vadd.f32 %v1313_v55, %v2000_v18  ;;  %v861_v57 = vpop.f32.mrb[13].mxu1 }
 0x286   : > { %v862_v58 = vadd.f32 %v2000_v18, %v861_v57  ;;  %v1314_v59 = vpop.f32.mrb[14].mxu1 }
 0x287   : > { %v954_v60 = vmax.f32 %v870_v56, 0.0  ;;  %v873_v61 = vadd.f32 %v1314_v59, %v2000_v18  ;;  %v864_v62 = vpop.f32.mrb[15].mxu1 }
 0x288   : > { %v952_v63 = vmax.f32 %v862_v58, 0.0  ;;  %v865_v0 = vadd.f32 %v2000_v18, %v864_v62 }
 0x289   : > { %986 = vst [vmem:[%s2007_s26 + $0x70] sm:$0xff] %v954_v60  ;;  %v955_v1 = vmax.f32 %v873_v61, 0.0 }
 0x28a   : > { %984 = vst [vmem:[%s2007_s26 + $0x60] sm:$0xff] %v952_v63  ;;  %v953_v2 = vmax.f32 %v865_v0, 0.0 }
 0x28b   : > { %987 = vst [vmem:[%s2007_s26 + $0x78] sm:$0xff] %v955_v1 }
 0x28c   : > { %985 = vst [vmem:[%s2007_s26 + $0x68] sm:$0xff] %v953_v2  ;;  %v1317_v3 = vpop.f32.mrb[16].mxu1 }
 0x28d   : > { %v886_v4 = vadd.f32 %v1317_v3, %v2000_v18  ;;  %v877_v5 = vpop.f32.mrb[17].mxu1 }
 0x28e   : > { %v878_v6 = vadd.f32 %v2000_v18, %v877_v5  ;;  %v1318_v7 = vpop.f32.mrb[18].mxu1 }
 0x28f   : > { %v958_v8 = vmax.f32 %v886_v4, 0.0  ;;  %v889_v9 = vadd.f32 %v1318_v7, %v2000_v18  ;;  %v880_v10 = vpop.f32.mrb[19].mxu1 }
 0x290   : > { %v956_v11 = vmax.f32 %v878_v6, 0.0  ;;  %v881_v12 = vadd.f32 %v2000_v18, %v880_v10 }
 0x291   : > { %990 = vst [vmem:[%s2007_s26 + $0x90] sm:$0xff] %v958_v8  ;;  %v959_v13 = vmax.f32 %v889_v9, 0.0 }
 0x292   : > { %988 = vst [vmem:[%s2007_s26 + $0x80] sm:$0xff] %v956_v11  ;;  %v957_v14 = vmax.f32 %v881_v12, 0.0 }
 0x293   : > { %991 = vst [vmem:[%s2007_s26 + $0x98] sm:$0xff] %v959_v13 }
 0x294   : > { %989 = vst [vmem:[%s2007_s26 + $0x88] sm:$0xff] %v957_v14  ;;  %v1321_v15 = vpop.f32.mrb[20].mxu1 }
 0x295   : > { %v902_v16 = vadd.f32 %v1321_v15, %v2000_v18  ;;  %v893_v17 = vpop.f32.mrb[21].mxu1 }
 0x296   : > { %v894_v19 = vadd.f32 %v2000_v18, %v893_v17  ;;  %v1322_v20 = vpop.f32.mrb[22].mxu1 }
 0x297   : > { %v962_v21 = vmax.f32 %v902_v16, 0.0  ;;  %v905_v22 = vadd.f32 %v1322_v20, %v2000_v18  ;;  %v896_v23 = vpop.f32.mrb[23].mxu1 }
 0x298   : > { %v960_v24 = vmax.f32 %v894_v19, 0.0  ;;  %v897_v32 = vadd.f32 %v2000_v18, %v896_v23 }
 0x299   : > { %994 = vst [vmem:[%s2007_s26 + $0xb0] sm:$0xff] %v962_v21  ;;  %v963_v25 = vmax.f32 %v905_v22, 0.0 }
 0x29a   : > { %992 = vst [vmem:[%s2007_s26 + $0xa0] sm:$0xff] %v960_v24  ;;  %v961_v26 = vmax.f32 %v897_v32, 0.0 }
 0x29b   : > { %995 = vst [vmem:[%s2007_s26 + $0xb8] sm:$0xff] %v963_v25 }
 0x29c   : > { %993 = vst [vmem:[%s2007_s26 + $0xa8] sm:$0xff] %v961_v26  ;;  %v1325_v27 = vpop.f32.mrb[24].mxu1 }
 0x29d   : > { %v918_v28 = vadd.f32 %v1325_v27, %v2000_v18  ;;  %v909_v29 = vpop.f32.mrb[25].mxu1 }
 0x29e   : > { %v910_v30 = vadd.f32 %v2000_v18, %v909_v29  ;;  %v1326_v31 = vpop.f32.mrb[26].mxu1 }
 0x29f   : > { %v966_v33 = vmax.f32 %v918_v28, 0.0  ;;  %v921_v34 = vadd.f32 %v1326_v31, %v2000_v18  ;;  %v912_v35 = vpop.f32.mrb[27].mxu1 }
 0x2a0   : > { %v964_v36 = vmax.f32 %v910_v30, 0.0  ;;  %v913_v37 = vadd.f32 %v2000_v18, %v912_v35 }
 0x2a1   : > { %998 = vst [vmem:[%s2007_s26 + $0xd0] sm:$0xff] %v966_v33  ;;  %v967_v38 = vmax.f32 %v921_v34, 0.0 }
 0x2a2   : > { %996 = vst [vmem:[%s2007_s26 + $0xc0] sm:$0xff] %v964_v36  ;;  %v965_v39 = vmax.f32 %v913_v37, 0.0 }
 0x2a3   : > { %999 = vst [vmem:[%s2007_s26 + $0xd8] sm:$0xff] %v967_v38 }
 0x2a4   : > { %997 = vst [vmem:[%s2007_s26 + $0xc8] sm:$0xff] %v965_v39  ;;  %v1329_v40 = vpop.f32.mrb[28].mxu1 }
 0x2a5   : > { %v934_v41 = vadd.f32 %v1329_v40, %v2000_v18  ;;  %v925_v42 = vpop.f32.mrb[29].mxu1 }
 0x2a6   : > { %v926_v43 = vadd.f32 %v2000_v18, %v925_v42  ;;  %v1330_v44 = vpop.f32.mrb[30].mxu1 }
 0x2a7   : > { %v970_v45 = vmax.f32 %v934_v41, 0.0  ;;  %v937_v46 = vadd.f32 %v1330_v44, %v2000_v18  ;;  %v928_v47 = vpop.f32.mrb[31].mxu1 }
 0x2a8   : > { %v968_v48 = vmax.f32 %v926_v43, 0.0  ;;  %v929_v49 = vadd.f32 %v2000_v18, %v928_v47 }
 0x2a9   : > { %1002 = vst [vmem:[%s2007_s26 + $0xf0] sm:$0xff] %v970_v45  ;;  %v971_v50 = vmax.f32 %v937_v46, 0.0 }
 0x2aa   : > { %1000 = vst [vmem:[%s2007_s26 + $0xe0] sm:$0xff] %v968_v48  ;;  %v969_v51 = vmax.f32 %v929_v49, 0.0 }
 0x2ab   : > { %1003 = vst [vmem:[%s2007_s26 + $0xf8] sm:$0xff] %v971_v50 }
 0x2ac   : > { %1001 = vst [vmem:[%s2007_s26 + $0xe8] sm:$0xff] %v969_v51 }
 0x2ad   : > { %1609 = shalt.err (!%p1606_p13)
}
 0x2ae   : > { %s1610_s12 = scalar_lea.hbm %s2071_s28, 4096  ;;  %s1614_s15 = scalar_lea.hbm %s2125_s5, 8192 }
 0x2af   : > { %p1611_p9 = scmp.ne.s32.totalorder %s2071_s28, %s1610_s12  ;;  %p1615_p6 = scmp.lt.u32.totalorder %s2071_s28, %s2125_s5 }
 0x2b0   : > { %p1616_p4 = scmp.lt.u32.totalorder %s1614_s15, %s1610_s12  ;;  %p1618_p3 = scmp.lt.u32.totalorder %s1610_s12, %s2071_s28 }
 0x2b1   : > { %p1612_p0 = pnand %p1611_p9, %p1877_p10 }
 0x2b2   : > { %p1617_p8 = por %p1616_p4, %p1615_p6 }
 0x2b3   : > { %p1613_p11 = pneg %p1612_p0 }
 0x2b4   : > { %p1619_p5 = por %p1618_p3, %p1617_p8 }
 0x2b6   : > { %p1620_p7 = pnand %p1619_p5, %p1613_p11 }
 0x2b8   : > { %1623 = shalt.err (!%p1620_p7)
}
 0x2b9   : > { %s1680_s23 = smov 128   ;;  %s1681_s16 = smov 8  }
 0x2ba   : > { %1349 = dma.vmem_to_hbm [thread:$0]  (%p1877_p10), %s2073_s27, 4096, %s2071_s28, %s1005_s22, %s1680_s23, %s1680_s23, %s1681_s16  }
 0x2bb PF: > { %s1033_s6 = sand.u32 1, %s1658_s18   ;;  %p2143_p12 = scmp.ne.s32.totalorder %s2130_s25, 0 }
 0x2bc   : > { %p2144_p1 = scmp.ge.s32.totalorder %s1670_s21, 2  ;;  %s1034_s17 = scalar_lea.sflag [#allocation4], %s1033_s6 }
 0x2be   : > { %p1369_p2 = pnand %p2144_p1, %p2143_p12 }
 0x2c0   : > { %1653 = dma.done.wait (!%p1369_p2), %s1034_s17, 4096  }
 0x2c1   : > { %1655 = vsyncadd (!%p1369_p2), %s1034_s17, 4294963200  ;;  %p20_p13 = scmp.ge.s32.totalorder %s1867_s14, 4   ;;  %s2145_s18 = smov %s1662_s19 }
 0x2c2   : > { %s2146_s19 = smov %s1666_s20  ;;  %s2147_s20 = smov %s1883_s10 }
 0x2c3   : > { %s2148_s21 = smov %s1867_s14  ;;  %22 = sbr.rel (!%p20_p13) target bundleno = 7 (0x7), region = 101 }
 0x2ca   :  { %1039 = vsyncpa [#allocation3], 1 }
 0x2cb   :  { %1041 = vsyncpa [#allocation3 + $0x1], 1 }
 0x2cc   :  { %1042 = vsyncpa [#allocation6], 1 }
 0x2cd   :  { %1043 = vsyncpa [#allocation9], 1 }
 0x2ce   :  { %1044 = vsyncpa [#allocation4], 1 }
 0x2cf   :  { %1046 = vsyncpa [#allocation4 + $0x1], 1 }

</bundles_post_ra>
